<compile_context>
chip_gen: v5e
topology: v5e:2x2
jax: 0.10.0
libtpu: 0.0.40
codegen_flags: <defaults>
</compile_context>

<pallas_src>
import jax
import jax.numpy as jnp
from jax.experimental import pallas as pl
from jax.experimental.pallas import tpu as pltpu


def _round_up(n, m):
    return ((n + m - 1) // m) * m


def _mxu_align(n):
    # v6e/v7x MXUs are 2x256^2 -> 256-align K/N when the dim is large enough;
    # 128 (vreg lane width) otherwise to avoid 4x padding waste on tiny dims.
    return 128 if n <= 128 else 256


def _vmem_capacity_bytes():
    try:
        return int(pltpu.get_tpu_info().vmem_capacity_bytes)
    except Exception:
        return 64 << 20  # conservative: v7x per-TensorCore VMEM


def mlp_kernel(x_ref, w1_ref, b1_ref, w2_ref, b2_ref, o_ref):
    # x: [TB, Dp] bf16, w1: [Dp, Dp] bf16, b1: [1, Dp] f32,
    # w2: [Dp, Op] bf16, b2: [1, Op] f32, o: [TB, Op] f32
    h = jnp.dot(x_ref[...], w1_ref[...], preferred_element_type=jnp.float32)
    h = jnp.maximum(h + b1_ref[...], 0.0)                       # f32 bias + ReLU (VPU)
    y = jnp.dot(h.astype(jnp.bfloat16), w2_ref[...],
                preferred_element_type=jnp.float32) + b2_ref[...]
    o_ref[...] = jax.nn.sigmoid(y).astype(o_ref.dtype)          # sigmoid (EUP)


def prepare_params(w1, b1, w2, b2):
    """Pads weights lane-dense and casts MXU operands to bf16 ONCE, at init."""
    D, Dh = w1.shape
    Dh2, O = w2.shape
    assert Dh == D and Dh2 == D, "hidden_dim must equal input_dim"
    Dp = _round_up(D, _mxu_align(D))
    Op = _round_up(O, _mxu_align(O))
    f32, bf16 = jnp.float32, jnp.bfloat16
    w1p = jnp.zeros((Dp, Dp), bf16).at[:D, :D].set(w1.astype(bf16))
    b1p = jnp.zeros((1, Dp), f32).at[:, :D].set(b1.astype(f32))
    w2p = jnp.zeros((Dp, Op), bf16).at[:D, :O].set(w2.astype(bf16))
    b2p = jnp.zeros((1, Op), f32).at[:, :O].set(b2.astype(f32))
    # Padding is semantics-preserving: padded W1 columns give zero hidden
    # pre-activations with zero bias -> relu(0)=0; padded W2 rows are zero;
    # padded output columns are sliced off in mlp_forward.
    return dict(w1=w1p, b1=b1p, w2=w2p, b2=b2p, D=D, O=O, Dp=Dp, Op=Op)


def _choose_batch_tile(B, Dp, Op, weight_bytes, vmem_cap, block_rows):
    SUB = 16  # bf16 sublane tile is (16, 128)
    b_aligned = _round_up(B, SUB)
    # Per batch-row VMEM: double-buffered bf16 x tile + double-buffered f32 out tile.
    per_row = 2 * Dp * 2 + 2 * Op * 4
    headroom = 4 << 20
    avail = vmem_cap - weight_bytes - headroom
    # TODO(synk): for very large D where resident W1 no longer fits (e.g. v7x
    # 64 MiB), add a K-reduction grid axis (f32 acc scratch + pl.when
    # init/finalize) instead of failing here.
    assert avail >= per_row * SUB, (
        "resident weights leave no room for an activation tile in VMEM; "
        "needs a K-tiled fallback for this problem size")
    tb_budget = max(SUB, (avail // per_row) // SUB * SUB)
    tb = min(block_rows, b_aligned, tb_budget)
    # Guarantee >=2 grid steps whenever the aligned batch allows it so the
    # "parallel" axis can actually be split across v7x's two TensorCores.
    if b_aligned >= 2 * SUB and tb >= b_aligned:
        tb = _round_up(pl.cdiv(b_aligned, 2), SUB)
    return max(SUB, (tb // SUB) * SUB)


def mlp_forward(x, params, *, block_rows=1024):
    """Fused 2-layer MLP on lane-dense padded operands; slices off padding."""
    B, D = x.shape
    assert D == params["D"], "feature dim mismatch with prepared params"
    Dp, Op, O = params["Dp"], params["Op"], params["O"]
    w1p, b1p, w2p, b2p = params["w1"], params["b1"], params["w2"], params["b2"]

    vmem_cap = _vmem_capacity_bytes()
    # Resident weight footprint (default pipeliner double-buffers them).
    # TODO(synk): on v7x, single-buffer the constant-index_map weight specs via
    # pipeline_mode=pl.Buffered(1) to halve this; kept default buffering for
    # portability across jax versions.
    weight_bytes = 2 * (Dp * Dp * 2 + Dp * 4 + Dp * Op * 2 + Op * 4)

    TB = _choose_batch_tile(B, Dp, Op, weight_bytes, vmem_cap, block_rows)
    Bp = _round_up(B, TB)
    nb = Bp // TB

    # Only x is padded per call (and only when actually needed).
    xb = x.astype(jnp.bfloat16)
    if (Bp, Dp) != (B, D):
        xb = jnp.zeros((Bp, Dp), jnp.bfloat16).at[:B, :D].set(xb)

    tile_bytes = TB * (2 * Dp * 2 + 2 * Op * 4)
    vmem_limit = int(min(max(weight_bytes + tile_bytes + (8 << 20), 32 << 20),
                         vmem_cap))

    out_p = pl.pallas_call(
        mlp_kernel,
        out_shape=jax.ShapeDtypeStruct((Bp, Op), jnp.float32),
        grid=(nb,),
        in_specs=[
            pl.BlockSpec((TB, Dp), lambda i: (i, 0)),   # x tile (bf16), pipelined
            pl.BlockSpec((Dp, Dp), lambda i: (0, 0)),   # W1 (bf16), resident
            pl.BlockSpec((1, Dp),  lambda i: (0, 0)),   # b1 (f32), resident
            pl.BlockSpec((Dp, Op), lambda i: (0, 0)),   # W2 (bf16), resident
            pl.BlockSpec((1, Op),  lambda i: (0, 0)),   # b2 (f32), resident
        ],
        out_specs=pl.BlockSpec((TB, Op), lambda i: (i, 0)),
        compiler_params=pltpu.CompilerParams(
            dimension_semantics=("parallel",),          # megacore split on v7x
            vmem_limit_bytes=vmem_limit,
        ),
    )(xb, w1p, b1p, w2p, b2p)

    # TODO(synk): emit bf16 output when the consumer tolerates it (halves the
    # writeback and the output tile VMEM); kept f32 here for the precision check.
    # TODO(synk): for tiny B*D an XLA fallback avoids the ~0.35us/step + padding
    # overhead; kept on the Pallas path per the task requirements.
    return out_p[:B, :O]


def init_params(key, input_dim, output_dim):
    """Deterministic init mimicking torch.nn.Linear (uniform +-1/sqrt(fan_in))."""
    hidden_dim = input_dim
    k1, k2, k3, k4 = jax.random.split(key, 4)
    bound1 = 1.0 / jnp.sqrt(hidden_dim)
    w1 = jax.random.uniform(k1, (hidden_dim, hidden_dim), jnp.float32, -bound1, bound1)
    b1 = jax.random.uniform(k2, (1, hidden_dim), jnp.float32, -bound1, bound1)
    bound2 = 1.0 / jnp.sqrt(hidden_dim)
    w2 = jax.random.uniform(k3, (hidden_dim, output_dim), jnp.float32, -bound2, bound2)
    b2 = jax.random.uniform(k4, (1, output_dim), jnp.float32, -bound2, bound2)
    return w1, b1, w2, b2


def reference_forward(x, w1, b1, w2, b2):
    h = jnp.maximum(x @ w1 + b1, 0.0)
    return jax.nn.sigmoid(h @ w2 + b2)


if __name__ == "__main__":
    key = jax.random.PRNGKey(0)
    kx, kp = jax.random.split(key)

    batch, input_dim, output_dim = 8, 32, 16
    x = jax.random.normal(kx, (batch, input_dim), dtype=jnp.float32)
    w1, b1, w2, b2 = init_params(kp, input_dim, output_dim)

    params = prepare_params(w1, b1, w2, b2)   # one-time padding/casting
    out = mlp_forward(x, params)
    out = jax.block_until_ready(out)

    ref = reference_forward(x, w1, b1, w2, b2)
    assert out.shape == (batch, output_dim)
    # bf16 MXU operands with f32 accumulation -> compare at bf16-level tolerance.
    assert jnp.allclose(out, ref, atol=2e-2, rtol=2e-2), float(jnp.max(jnp.abs(out - ref)))

    print("KERNEL_OK")
</pallas_src>

<mosaic_0001>
module attributes {stable_mosaic.version = 11 : i64} {
  func.func @mlp_kernel(%arg0: i32, %arg1: memref<16x128xbf16, #tpu.memory_space<vmem>>, %arg2: memref<128x128xbf16, #tpu.memory_space<vmem>>, %arg3: memref<1x128xf32, #tpu.memory_space<vmem>>, %arg4: memref<128x128xbf16, #tpu.memory_space<vmem>>, %arg5: memref<1x128xf32, #tpu.memory_space<vmem>>, %arg6: memref<16x128xf32, #tpu.memory_space<vmem>>) attributes {dimension_semantics = [#tpu.dimension_semantics<parallel>], iteration_bounds = array<i64: 1>, scalar_prefetch = 0 : i64, scratch_operands = 0 : i64, tpu.core_type = #tpu.core_type<tc>, window_params = [{transform_indices = @transform_0, window_bounds = array<i64: 16, 128>}, {pipeline_mode = #tpu.pipeline_mode<synchronous>, transform_indices = @transform_1, window_bounds = array<i64: 128, 128>}, {pipeline_mode = #tpu.pipeline_mode<synchronous>, transform_indices = @transform_2, window_bounds = array<i64: 1, 128>}, {pipeline_mode = #tpu.pipeline_mode<synchronous>, transform_indices = @transform_3, window_bounds = array<i64: 128, 128>}, {pipeline_mode = #tpu.pipeline_mode<synchronous>, transform_indices = @transform_4, window_bounds = array<i64: 1, 128>}, {transform_indices = @transform_5, window_bounds = array<i64: 16, 128>}]} {
    %c0 = arith.constant 0 : index
    %c0_0 = arith.constant 0 : index
    %0 = vector.load %arg1[%c0, %c0_0] : memref<16x128xbf16, #tpu.memory_space<vmem>>, vector<16x128xbf16>
    %c0_1 = arith.constant 0 : index
    %c0_2 = arith.constant 0 : index
    %1 = vector.load %arg2[%c0_1, %c0_2] : memref<128x128xbf16, #tpu.memory_space<vmem>>, vector<128x128xbf16>
    %cst = arith.constant dense<0.000000e+00> : vector<16x128xf32>
    %2 = tpu.matmul %0, %1, %cst {dimension_numbers = #tpu.dot_dimension_numbers<[1], [0], [0], [1], [0, 0, 1, 1], [], []>} : vector<16x128xbf16>, vector<128x128xbf16>, vector<16x128xf32> -> vector<16x128xf32>
    %c0_3 = arith.constant 0 : index
    %c0_4 = arith.constant 0 : index
    %3 = vector.load %arg3[%c0_3, %c0_4] : memref<1x128xf32, #tpu.memory_space<vmem>>, vector<1x128xf32>
    %4 = vector.broadcast %3 : vector<1x128xf32> to vector<16x128xf32>
    %5 = arith.addf %2, %4 : vector<16x128xf32>
    %cst_5 = arith.constant 0.000000e+00 : f32
    %6 = vector.broadcast %cst_5 : f32 to vector<16x128xf32>
    %7 = arith.maximumf %5, %6 : vector<16x128xf32>
    %8 = arith.truncf %7 : vector<16x128xf32> to vector<16x128xbf16>
    %c0_6 = arith.constant 0 : index
    %c0_7 = arith.constant 0 : index
    %9 = vector.load %arg4[%c0_6, %c0_7] : memref<128x128xbf16, #tpu.memory_space<vmem>>, vector<128x128xbf16>
    %cst_8 = arith.constant dense<0.000000e+00> : vector<16x128xf32>
    %10 = tpu.matmul %8, %9, %cst_8 {dimension_numbers = #tpu.dot_dimension_numbers<[1], [0], [0], [1], [0, 0, 1, 1], [], []>} : vector<16x128xbf16>, vector<128x128xbf16>, vector<16x128xf32> -> vector<16x128xf32>
    %c0_9 = arith.constant 0 : index
    %c0_10 = arith.constant 0 : index
    %11 = vector.load %arg5[%c0_9, %c0_10] : memref<1x128xf32, #tpu.memory_space<vmem>>, vector<1x128xf32>
    %12 = vector.broadcast %11 : vector<1x128xf32> to vector<16x128xf32>
    %13 = arith.addf %10, %12 : vector<16x128xf32>
    %14 = arith.negf %13 : vector<16x128xf32>
    %15 = math.exp %14 : vector<16x128xf32>
    %cst_11 = arith.constant 1.000000e+00 : f32
    %16 = vector.broadcast %cst_11 : f32 to vector<16x128xf32>
    %17 = arith.addf %16, %15 : vector<16x128xf32>
    %18 = arith.divf %16, %17 : vector<16x128xf32>
    %c0_12 = arith.constant 0 : index
    %c0_13 = arith.constant 0 : index
    %19 = vector.load %arg6[%c0_12, %c0_13] : memref<16x128xf32, #tpu.memory_space<vmem>>, vector<16x128xf32>
    tpu.vector_store %arg6[%c0_12, %c0_13], %18 {strides = array<i32>} : memref<16x128xf32, #tpu.memory_space<vmem>>, vector<16x128xf32>,
    return
  }
  func.func @transform_0(%arg0: i32) -> (i32, i32) {
    %c0_i32 = arith.constant 0 : i32
    %c0_i32_0 = arith.constant 0 : i32
    return %arg0, %c0_i32 : i32, i32
  }
  func.func @transform_1(%arg0: i32) -> (i32, i32) {
    %c0_i32 = arith.constant 0 : i32
    %c0_i32_0 = arith.constant 0 : i32
    %c0_i32_1 = arith.constant 0 : i32
    return %c0_i32, %c0_i32_0 : i32, i32
  }
  func.func @transform_2(%arg0: i32) -> (i32, i32) {
    %c0_i32 = arith.constant 0 : i32
    %c0_i32_0 = arith.constant 0 : i32
    %c0_i32_1 = arith.constant 0 : i32
    return %c0_i32, %c0_i32_0 : i32, i32
  }
  func.func @transform_3(%arg0: i32) -> (i32, i32) {
    %c0_i32 = arith.constant 0 : i32
    %c0_i32_0 = arith.constant 0 : i32
    %c0_i32_1 = arith.constant 0 : i32
    return %c0_i32, %c0_i32_0 : i32, i32
  }
  func.func @transform_4(%arg0: i32) -> (i32, i32) {
    %c0_i32 = arith.constant 0 : i32
    %c0_i32_0 = arith.constant 0 : i32
    %c0_i32_1 = arith.constant 0 : i32
    return %c0_i32, %c0_i32_0 : i32, i32
  }
  func.func @transform_5(%arg0: i32) -> (i32, i32) {
    %c0_i32 = arith.constant 0 : i32
    %c0_i32_0 = arith.constant 0 : i32
    return %arg0, %c0_i32 : i32, i32
  }
}

</mosaic_0001>

<bundles_post_ra>
// kernel: tpu_custom_call.1
= control target key start
LH: loop header
LB: loop body
LE: loop exit
PB: predicated region body
PF: predicated region fallthrough
CT: control target
= control target key end

     0   :  { %10 = vsyncpa [#allocation3], 0  ;;  %s566_s0 = inlined_call_operand.hbm [shape: bf16[16,128], index: 0, kind: input, shape index: {}]   ;;  %s567_s1 = inlined_call_operand.hbm [shape: bf16[128,128], index: 1, kind: input, shape index: {}]   ;;  %s568_s2 = inlined_call_operand.vmem [shape: f32[1,128], index: 2, kind: input, shape index: {}]   ;;  %s569_s3 = inlined_call_operand.hbm [shape: bf16[128,128], index: 3, kind: input, shape index: {}]   ;;  %s570_s4 = inlined_call_operand.vmem [shape: f32[1,128], index: 4, kind: input, shape index: {}]   ;;  %s571_s5 = inlined_call_operand.hbm [shape: f32[16,128], index: 5, kind: output, shape index: {}]  }
   0x1   :  { %11 = vsyncpa [#allocation6], 0 }
   0x2   :  { %12 = vsyncpa [#allocation4], 0  ;;  %s30_s20 = sshll.u32 %s567_s1, 4  ;;  %s510_s21 = smov [#allocation5]   ;;  %s31_s20 = int_to_ptr.hbm [resolvable:$true] %s30_s20 }
   0x3   :  { %s32_s22 = sshll.u32 %s510_s21, 4  ;;  %s17_s25 = sshll.u32 %s566_s0, 4  ;;  %s33_s22 = int_to_ptr.vmem [resolvable:$true] %s32_s22  ;;  %s18_s25 = int_to_ptr.hbm [resolvable:$true] %s17_s25 }
   0x4   :  { %s511_s26 = smov 64   ;;  %s512_s27 = smov 4  }
   0x5   :  { %38 = dma.hbm_to_vmem [thread:$0]  %s31_s20, 1024, %s33_s22, [#allocation6], %s511_s26, %s511_s26, %s512_s27  }
   0x6   :  { %s513_s28 = smov [#allocation2]   ;;  %s45_s7 = sshll.u32 %s569_s3, 4  ;;  %s46_s7 = int_to_ptr.hbm [resolvable:$true] %s45_s7 }
   0x7   :  { %s19_s29 = sshll.u32 %s513_s28, 4  ;;  %s514_s1 = smov [#allocation7]   ;;  %s20_s29 = int_to_ptr.vmem [resolvable:$true] %s19_s29 }
   0x8   :  { %25 = dma.hbm_to_vmem [thread:$0]  %s18_s25, 128, %s20_s29, [#allocation3], %s511_s26, %s511_s26, %s512_s27  }
   0x9   :  { %s47_s8 = sshll.u32 %s514_s1, 4  ;;  %s48_s8 = int_to_ptr.vmem [resolvable:$true] %s47_s8 }
   0xa   :  { %53 = dma.hbm_to_vmem [thread:$0]  %s46_s7, 1024, %s48_s8, [#allocation6], %s511_s26, %s511_s26, %s512_s27  }
   0xb   :  { %504 = dma.done.wait [#allocation3], 128  }
   0xc   :  { %505 = vsyncadd [#allocation3], 4294967168 }
   0xd   :  { %506 = dma.done.wait [#allocation6], 2048  }
   0xe   :  { %507 = vsyncadd [#allocation6], 4294965248  ;;  %v381_v0 = vld [vmem:[#allocation5 + $0x38] sm:$0xff]  ;;  %v380_v1 = vld [vmem:[#allocation5 + $0x30] sm:$0xff]  ;;  %s289_s13 = sshll.u32 %s571_s5, 4  ;;  %s516_s14 = smov 128   ;;  %s290_s13 = int_to_ptr.hbm [resolvable:$true] %s289_s13 }
   0xf   :  { %144 = vmatpush.bf16.msra.mxu0 %v381_v0  ;;  %v389_v2 = vld [vmem:[#allocation7 + $0x38] sm:$0xff]  ;;  %v388_v3 = vld [vmem:[#allocation7 + $0x30] sm:$0xff]  ;;  %v379_v4 = vld [vmem:[#allocation5 + $0x28] sm:$0xff]  ;;  %s517_s15 = smov 8  }
  0x10   :  { %229 = vmatpush.bf16.msra.mxu1 %v389_v2  ;;  %v387_v5 = vld [vmem:[#allocation7 + $0x28] sm:$0xff]  ;;  %v378_v6 = vld [vmem:[#allocation5 + $0x20] sm:$0xff]  ;;  %v377_v8 = vld [vmem:[#allocation5 + $0x18] sm:$0xff] }
  0x11   :  { %v386_v7 = vld [vmem:[#allocation7 + $0x20] sm:$0xff]  ;;  %v376_v9 = vld [vmem:[#allocation5 + $0x10] sm:$0xff]  ;;  %v375_v10 = vld [vmem:[#allocation5 + $0x8] sm:$0xff] }
  0x12   :  { %v374_v11 = vld [vmem:[#allocation5] sm:$0xff]  ;;  %v373_v12 = vld [vmem:[#allocation2] sm:$0xff]  ;;  %v384_v14 = vld [vmem:[#allocation7 + $0x10] sm:$0xff] }
  0x13   :  { %145 = vmatpush.bf16.msra.mxu0 %v380_v1  ;;  %v385_v13 = vld [vmem:[#allocation7 + $0x18] sm:$0xff]  ;;  %v383_v15 = vld [vmem:[#allocation7 + $0x8] sm:$0xff]  ;;  %v382_v16 = vld [vmem:[#allocation7] sm:$0xff] }
  0x14   :  { %230 = vmatpush.bf16.msra.mxu1 %v388_v3  ;;  %v398_v18 = vld [vmem:[%s568_s2] ss:$0 sm:$0xff]  ;;  %s515_s2 = smov [#allocation8]  }
  0x15   :  { %v399_v25 = vld [vmem:[%s570_s4] ss:$0 sm:$0xff]  ;;  %s287_s4 = sshll.u32 %s515_s2, 4  ;;  %s288_s4 = int_to_ptr.vmem [resolvable:$true] %s287_s4 }
  0x17   :  { %146 = vmatpush.bf16.msra.mxu0 %v379_v4 }
  0x18   :  { %231 = vmatpush.bf16.msra.mxu1 %v387_v5 }
  0x1b   :  { %147 = vmatpush.bf16.msra.mxu0 %v378_v6 }
  0x1c   :  { %232 = vmatpush.bf16.msra.mxu1 %v386_v7 }
  0x1f   :  { %148 = vmatpush.bf16.msra.mxu0 %v377_v8 }
  0x20   :  { %233 = vmatpush.bf16.msra.mxu1 %v385_v13 }
  0x23   :  { %149 = vmatpush.bf16.msra.mxu0 %v376_v9 }
  0x24   :  { %234 = vmatpush.bf16.msra.mxu1 %v384_v14 }
  0x27   :  { %150 = vmatpush.bf16.msra.mxu0 %v375_v10 }
  0x28   :  { %235 = vmatpush.bf16.msra.mxu1 %v383_v15 }
  0x2b   :  { %151 = vmatpush.bf16.msra.mxu0 %v374_v11 }
  0x2c   :  { %236 = vmatpush.bf16.msra.mxu1 %v382_v16 }
  0x2e   :  { %152 = vmatmul.bf16.vlgmr.msra.gmra.mxu0 %v373_v12 }
  0xab   :  { %v153_v17 = vpop.f32.mrf.mxu0 }
  0xac   :  { %v154_v19 = vadd.f32 %v398_v18, %v153_v17 }
  0xae   :  { %v158_v22 = vmax.f32 %v154_v19, 0.0 }
  0xb3   :  { %v155_v20 = vpop.f32.mrf.mxu0 }
  0xb4   :  { %v156_v21 = vadd.f32 %v398_v18, %v155_v20 }
  0xb6   :  { %v159_v23 = vmax.f32 %v156_v21, 0.0 }
  0xb8   :  { %v160_v24 = vpack.c.bf16 %v159_v23, %v158_v22 }
  0xba   :  { %237 = vmatmul.bf16.vlgmr.msra.gmra.mxu1 %v160_v24 }
 0x137   :  { %v238_v26 = vpop.f32.mrf.mxu1 }
 0x138   :  { %v239_v27 = vadd.f32 %v399_v25, %v238_v26 }
 0x13a   :  { %v371_v28 = vmul.f32 -1.442695, %v239_v27 }
 0x13c   :  { %400 = vpow2.f32 %v371_v28 }
 0x13f   :  { %v240_v29 = vpop.f32.mrf.mxu1 }
 0x140   :  { %v241_v30 = vadd.f32 %v399_v25, %v240_v29 }
 0x142   :  { %v401_v31 = vpop.eup %400  ;;  %v372_v32 = vmul.f32 -1.442695, %v241_v30 }
 0x143   :  { %v249_v33 = vadd.f32 1.0, %v401_v31 }
 0x144   :  { %402 = vpow2.f32 %v372_v32 }
 0x145   :  { %404 = vrcp.f32 %v249_v33  ;;  %v262_v39 = vand.u32 2147483648, %v249_v33  ;;  %v260_v41 = vand.u32 2147483647, %v249_v33  ;;  %vm256_vm1 = vweird.f32 %v249_v33 }
 0x147   :  { %v263_v44 = vor.u32 1.1754944e-38, %v262_v39  ;;  %vm261_vm3 = vcmp.eq.f32.partialorder %v260_v41, 8.507059e+37 }
 0x14a   :  { %v403_v34 = vpop.eup %402 }
 0x14b   :  { %v405_v35 = vpop.eup %404  ;;  %v250_v36 = vadd.f32 1.0, %v403_v34 }
 0x14c   :  { %v252_v37 = vmul.f32 %v405_v35, %v249_v33  ;;  %vm257_vm0 = vweird.f32 %v405_v35 }
 0x14d   :  { %406 = vrcp.f32 %v250_v36  ;;  %vm258_vm2 = vmor %vm256_vm1, %vm257_vm0  ;;  %v277_v49 = vand.u32 2147483648, %v250_v36  ;;  %v275_v51 = vand.u32 2147483647, %v250_v36  ;;  %vm271_vm5 = vweird.f32 %v250_v36 }
 0x14e   :  { %v253_v38 = vsub.f32 1.0, %v252_v37 }
 0x14f   :  { %v278_v53 = vor.u32 1.1754944e-38, %v277_v49  ;;  %vm276_vm7 = vcmp.eq.f32.partialorder %v275_v51, 8.507059e+37 }
 0x150   :  { %v254_v40 = vmul.f32 %v405_v35, %v253_v38 }
 0x152   :  { %v255_v42 = vadd.f32 %v405_v35, %v254_v40 }
 0x153   :  { %v407_v43 = vpop.eup %406 }
 0x154   :  { %v267_v45 = vmul.f32 %v407_v43, %v250_v36  ;;  %v259_v46 = vsel %vm258_vm2, %v405_v35, %v255_v42  ;;  %vm272_vm4 = vweird.f32 %v407_v43 }
 0x155   :  { %v264_v47 = vsel %vm261_vm3, %v263_v44, %v259_v46  ;;  %vm273_vm6 = vmor %vm271_vm5, %vm272_vm4 }
 0x156   :  { %v268_v48 = vsub.f32 1.0, %v267_v45  ;;  %281 = vst [vmem:[#allocation8] sm:$0xff] %v264_v47 }
 0x158   :  { %v269_v50 = vmul.f32 %v407_v43, %v268_v48 }
 0x15a   :  { %v270_v52 = vadd.f32 %v407_v43, %v269_v50 }
 0x15c   :  { %v274_v54 = vsel %vm273_vm6, %v407_v43, %v270_v52 }
 0x15d   :  { %v279_v55 = vsel %vm276_vm7, %v278_v53, %v274_v54 }
 0x15e   :  { %282 = vst [vmem:[#allocation8 + $0x8] sm:$0xff] %v279_v55 }
 0x15f   :  { %295 = dma.vmem_to_hbm [thread:$0]  %s288_s4, 256, %s290_s13, [#allocation4], %s516_s14, %s516_s14, %s517_s15  }
 0x160   :  { %508 = dma.done.wait [#allocation4], 256  }
 0x161   :  { %509 = vsyncadd [#allocation4], 4294967040 }
 0x162   :  { %300 = vsyncpa [#allocation3], 1 }
 0x163   :  { %301 = vsyncpa [#allocation6], 1 }
 0x164   :  { %302 = vsyncpa [#allocation4], 1 }

</bundles_post_ra>
